<compile_context>
chip_gen: v7x
topology: tpu7x:2x2x1
jax: 0.10.0
libtpu: 0.0.40
codegen_flags: <defaults>
</compile_context>

<pallas_src>
import functools

import jax
import jax.numpy as jnp
import numpy as np
from jax.experimental import pallas as pl
from jax.experimental.pallas import tpu as pltpu

MAX_NORM = 1.0
LANE = 128
SUBLANE = 8


def _round_up(x, m):
    return (x + m - 1) // m * m


def _pick_tb(bp):
    # Prefer MXU-filling batch tiles that still give nb >= 2 (megacore split on
    # v7x + DMA/compute pipelining everywhere); else the largest divisor of Bp.
    for cand in (256, 128, 64, 32, 16, 8):
        if bp % cand == 0 and bp // cand >= 2:
            return cand
    for cand in (256, 128, 64, 32, 16, 8):
        if bp % cand == 0:
            return cand
    return bp


def _pick_tk(vp):
    # Reduction tile over the (padded) vocab axis.
    if vp <= 1024:
        return vp
    for cand in (1024, 896, 768, 640, 512, 384, 256, 128):
        if vp % cand == 0:
            return cand
    return LANE


def _w2v_kernel(cnt_ref, emb_ref, w_ref, b_ref, out_ref, acc_ref, *, inv_c):
    k = pl.program_id(1)

    @pl.when(k == 0)
    def _():
        acc_ref[...] = jnp.zeros_like(acc_ref)

    # Fused lookup + context-sum: bf16 counts @ bf16 (pre-normalized) table,
    # f32 accumulation across vocab tiles.
    acc_ref[...] += jnp.dot(cnt_ref[...], emb_ref[...],
                            preferred_element_type=jnp.float32)

    @pl.when(k == pl.num_programs(1) - 1)
    def _():
        mean = acc_ref[...] * inv_c                                  # (TB, Ep) f32
        out = jnp.dot(mean.astype(jnp.bfloat16), w_ref[...],
                      preferred_element_type=jnp.float32) + b_ref[...]
        out_ref[...] = out.astype(out_ref.dtype)


def word2vec_forward(idx, emb_table, w_t, bias):
    """idx: (B, C) int32; emb_table: (V, E); w_t: (E, O); bias: (O,) -> (B, O) f32."""
    B, C = idx.shape
    V, E = emb_table.shape
    O = w_t.shape[1]
    assert C <= 256, "context counts must stay exact in bf16 (requires C <= 256)"

    Vp = _round_up(V, LANE)
    Ep = _round_up(E, LANE)
    Op = _round_up(O, LANE)
    Bp = _round_up(B, SUBLANE)

    TB = _pick_tb(Bp)
    nb = Bp // TB
    tk = _pick_tk(Vp)
    nk = Vp // tk

    # --- Wrapper-side one-time preprocessing --------------------------------
    # Embedding max_norm renorm (hoisted out of the kernel; eps placement
    # matches torch: max_norm / (norm + 1e-7)), then cast to bf16 and pad.
    emb_f32 = emb_table.astype(jnp.float32)
    norms = jnp.sqrt(jnp.sum(emb_f32 * emb_f32, axis=-1, keepdims=True))
    scale = jnp.where(norms > MAX_NORM, MAX_NORM / (norms + 1e-7), 1.0)
    emb_n = (emb_f32 * scale).astype(jnp.bfloat16)
    emb_p = jnp.zeros((Vp, Ep), jnp.bfloat16).at[:V, :E].set(emb_n)

    # Per-row token counts via scatter-add (no dense (B, C, Vp) one-hot
    # intermediate).  Counts <= C are exact in bf16.  Padded rows stay zero.
    rows = jnp.broadcast_to(jnp.arange(B, dtype=jnp.int32)[:, None], (B, C))
    cnt = (jnp.zeros((Bp, Vp), jnp.int32)
           .at[rows, idx.astype(jnp.int32)].add(1)
           .astype(jnp.bfloat16))

    # Lane-dense padded Linear parameters (padded rows/cols are zero; padded
    # output columns are sliced off below).
    w_p = jnp.zeros((Ep, Op), jnp.bfloat16).at[:E, :O].set(w_t.astype(jnp.bfloat16))
    b_p = jnp.zeros((1, Op), jnp.float32).at[0, :O].set(bias.astype(jnp.float32))

    kernel = functools.partial(_w2v_kernel, inv_c=1.0 / C)

    # VMEM budget: streamed blocks double-buffered, constant residents single.
    vmem_bytes = (2 * TB * tk * 2            # counts tile (bf16), 2 buffers
                  + 2 * tk * Ep * 2          # table tile (bf16), 2 buffers
                  + 1 * Ep * Op * 2          # W^T resident (bf16, Buffered(1))
                  + 1 * SUBLANE * Op * 4     # bias resident (f32, Buffered(1))
                  + 2 * TB * Op * 4          # output tile (f32), 2 buffers
                  + TB * Ep * 4)             # accumulator scratch (f32)
    vmem_limit = min(max(2 * vmem_bytes + (8 << 20), 16 << 20), 64 << 20)

    cost = pl.CostEstimate(
        flops=2 * Bp * Vp * Ep + 2 * Bp * Ep * Op + 2 * Bp * Op + Bp * Ep,
        transcendentals=0,
        bytes_accessed=(Bp * Vp * 2 + nb * Vp * Ep * 2 + Ep * Op * 2
                        + Op * 4 + Bp * Op * 4),
    )

    out_p = pl.pallas_call(
        kernel,
        out_shape=jax.ShapeDtypeStruct((Bp, Op), jnp.float32),
        grid=(nb, nk),
        in_specs=[
            # counts: streamed over batch and vocab tiles (bf16)
            pl.BlockSpec((TB, tk), lambda i, k: (i, k)),
            # table: streamed over vocab tiles (pre-normalized bf16)
            pl.BlockSpec((tk, Ep), lambda i, k: (k, 0)),
            # W^T / bias: constant-index residents -> single buffer
            pl.BlockSpec((Ep, Op), lambda i, k: (0, 0),
                         pipeline_mode=pl.Buffered(1)),
            pl.BlockSpec((1, Op), lambda i, k: (0, 0),
                         pipeline_mode=pl.Buffered(1)),
        ],
        out_specs=pl.BlockSpec((TB, Op), lambda i, k: (i, 0)),
        scratch_shapes=[pltpu.VMEM((TB, Ep), jnp.float32)],
        compiler_params=pltpu.CompilerParams(
            dimension_semantics=("parallel", "arbitrary"),
            vmem_limit_bytes=vmem_limit),
        cost_estimate=cost,
    )(cnt, emb_p, w_p, b_p)

    return out_p[:B, :O]


def word2vec_reference(idx, emb_table, w_t, bias):
    """Plain-JAX f32 reference matching the PyTorch forward semantics."""
    norms = jnp.linalg.norm(emb_table, axis=-1, keepdims=True)
    scale = jnp.where(norms > MAX_NORM, MAX_NORM / (norms + 1e-7), 1.0)
    emb_n = emb_table * scale
    e = emb_n[idx]                  # (B, C, E)
    m = e.mean(axis=1)              # (B, E)
    return m @ w_t + bias[None, :]  # (B, O)


if __name__ == "__main__":
    # Small, module-consistent shapes.
    B, C = 8, 8            # batch, context window
    V, E = 64, 32          # input_size (vocab), embedding_size
    O = V                  # output_size=None -> input_size

    key = jax.random.PRNGKey(0)
    k_idx, k_emb, k_w, k_b = jax.random.split(key, 4)

    # Deterministic synthetic parameters (shapes per torch.nn.Embedding / Linear).
    idx = jax.random.randint(k_idx, (B, C), 0, V, dtype=jnp.int32)
    emb_table = jax.random.normal(k_emb, (V, E), dtype=jnp.float32)      # Embedding.weight
    bound = 1.0 / np.sqrt(E)
    w = jax.random.uniform(k_w, (O, E), jnp.float32, -bound, bound)      # Linear.weight (O, E)
    b = jax.random.uniform(k_b, (O,), jnp.float32, -bound, bound)        # Linear.bias
    w_t = w.T                                                            # (E, O)

    out = word2vec_forward(idx, emb_table, w_t, b)
    out = jax.block_until_ready(out)

    ref = word2vec_reference(idx, emb_table, w_t, b)
    # Tolerance reflects bf16 MXU operands in the kernel (f32 accumulation).
    np.testing.assert_allclose(np.asarray(out), np.asarray(ref),
                               rtol=2e-2, atol=2e-2)

    print("KERNEL_OK")
</pallas_src>

<mosaic_0001>
module attributes {stable_mosaic.version = 11 : i64} {
  func.func @_w2v_kernel(%arg0: i32, %arg1: i32, %arg2: memref<8x128xbf16, #tpu.memory_space<vmem>>, %arg3: memref<128x128xbf16, #tpu.memory_space<vmem>>, %arg4: memref<128x128xbf16, #tpu.memory_space<vmem>>, %arg5: memref<1x128xf32, #tpu.memory_space<vmem>>, %arg6: memref<8x128xf32, #tpu.memory_space<vmem>>, %arg7: memref<8x128xf32, #tpu.memory_space<vmem>>) attributes {dimension_semantics = [#tpu.dimension_semantics<parallel>, #tpu.dimension_semantics<arbitrary>], iteration_bounds = array<i64: 1, 1>, scalar_prefetch = 0 : i64, scratch_operands = 1 : i64, tpu.core_type = #tpu.core_type<tc>, window_params = [{transform_indices = @transform_0, window_bounds = array<i64: 8, 128>}, {transform_indices = @transform_1, window_bounds = array<i64: 128, 128>}, {pipeline_mode = #tpu.pipeline_mode<synchronous>, transform_indices = @transform_2, window_bounds = array<i64: 128, 128>}, {pipeline_mode = #tpu.pipeline_mode<synchronous>, transform_indices = @transform_3, window_bounds = array<i64: 1, 128>}, {transform_indices = @transform_4, window_bounds = array<i64: 8, 128>}]} {
    %c0_i32 = arith.constant 0 : i32
    %0 = arith.cmpi eq, %arg1, %c0_i32 : i32
    %1 = arith.extui %0 : i1 to i32
    %c0_i32_0 = arith.constant 0 : i32
    %2 = arith.cmpi ne, %1, %c0_i32_0 : i32
    scf.if %2 {
      %cst_10 = arith.constant 0.000000e+00 : f32
      %12 = vector.broadcast %cst_10 : f32 to vector<8x128xf32>
      %c0_11 = arith.constant 0 : index
      %c0_12 = arith.constant 0 : index
      %13 = vector.load %arg7[%c0_11, %c0_12] : memref<8x128xf32, #tpu.memory_space<vmem>>, vector<8x128xf32>
      tpu.vector_store %arg7[%c0_11, %c0_12], %12 {strides = array<i32>} : memref<8x128xf32, #tpu.memory_space<vmem>>, vector<8x128xf32>,
    } else {
    }
    %c0 = arith.constant 0 : index
    %c0_1 = arith.constant 0 : index
    %3 = vector.load %arg7[%c0, %c0_1] : memref<8x128xf32, #tpu.memory_space<vmem>>, vector<8x128xf32>
    %c0_2 = arith.constant 0 : index
    %c0_3 = arith.constant 0 : index
    %4 = vector.load %arg2[%c0_2, %c0_3] : memref<8x128xbf16, #tpu.memory_space<vmem>>, vector<8x128xbf16>
    %c0_4 = arith.constant 0 : index
    %c0_5 = arith.constant 0 : index
    %5 = vector.load %arg3[%c0_4, %c0_5] : memref<128x128xbf16, #tpu.memory_space<vmem>>, vector<128x128xbf16>
    %cst = arith.constant dense<0.000000e+00> : vector<8x128xf32>
    %6 = tpu.matmul %4, %5, %cst {dimension_numbers = #tpu.dot_dimension_numbers<[1], [0], [0], [1], [0, 0, 1, 1], [], []>} : vector<8x128xbf16>, vector<128x128xbf16>, vector<8x128xf32> -> vector<8x128xf32>
    %7 = arith.addf %3, %6 : vector<8x128xf32>
    %c0_6 = arith.constant 0 : index
    %c0_7 = arith.constant 0 : index
    %8 = vector.load %arg7[%c0_6, %c0_7] : memref<8x128xf32, #tpu.memory_space<vmem>>, vector<8x128xf32>
    tpu.vector_store %arg7[%c0_6, %c0_7], %7 {strides = array<i32>} : memref<8x128xf32, #tpu.memory_space<vmem>>, vector<8x128xf32>,
    %c0_i32_8 = arith.constant 0 : i32
    %9 = arith.cmpi eq, %arg1, %c0_i32_8 : i32
    %10 = arith.extui %9 : i1 to i32
    %c0_i32_9 = arith.constant 0 : i32
    %11 = arith.cmpi ne, %10, %c0_i32_9 : i32
    scf.if %11 {
      %c0_10 = arith.constant 0 : index
      %c0_11 = arith.constant 0 : index
      %12 = vector.load %arg7[%c0_10, %c0_11] : memref<8x128xf32, #tpu.memory_space<vmem>>, vector<8x128xf32>
      %cst_12 = arith.constant 1.250000e-01 : f32
      %13 = vector.broadcast %cst_12 : f32 to vector<8x128xf32>
      %14 = arith.mulf %12, %13 : vector<8x128xf32>
      %15 = arith.truncf %14 : vector<8x128xf32> to vector<8x128xbf16>
      %c0_13 = arith.constant 0 : index
      %c0_14 = arith.constant 0 : index
      %16 = vector.load %arg4[%c0_13, %c0_14] : memref<128x128xbf16, #tpu.memory_space<vmem>>, vector<128x128xbf16>
      %cst_15 = arith.constant dense<0.000000e+00> : vector<8x128xf32>
      %17 = tpu.matmul %15, %16, %cst_15 {dimension_numbers = #tpu.dot_dimension_numbers<[1], [0], [0], [1], [0, 0, 1, 1], [], []>} : vector<8x128xbf16>, vector<128x128xbf16>, vector<8x128xf32> -> vector<8x128xf32>
      %c0_16 = arith.constant 0 : index
      %c0_17 = arith.constant 0 : index
      %18 = vector.load %arg5[%c0_16, %c0_17] : memref<1x128xf32, #tpu.memory_space<vmem>>, vector<1x128xf32>
      %19 = vector.broadcast %18 : vector<1x128xf32> to vector<8x128xf32>
      %20 = arith.addf %17, %19 : vector<8x128xf32>
      %c0_18 = arith.constant 0 : index
      %c0_19 = arith.constant 0 : index
      %21 = vector.load %arg6[%c0_18, %c0_19] : memref<8x128xf32, #tpu.memory_space<vmem>>, vector<8x128xf32>
      tpu.vector_store %arg6[%c0_18, %c0_19], %20 {strides = array<i32>} : memref<8x128xf32, #tpu.memory_space<vmem>>, vector<8x128xf32>,
    } else {
    }
    return
  }
  func.func @transform_0(%arg0: i32, %arg1: i32) -> (i32, i32) {
    %c0_i32 = arith.constant 0 : i32
    return %arg0, %arg1 : i32, i32
  }
  func.func @transform_1(%arg0: i32, %arg1: i32) -> (i32, i32) {
    %c0_i32 = arith.constant 0 : i32
    %c0_i32_0 = arith.constant 0 : i32
    return %arg1, %c0_i32 : i32, i32
  }
  func.func @transform_2(%arg0: i32, %arg1: i32) -> (i32, i32) {
    %c0_i32 = arith.constant 0 : i32
    %c0_i32_0 = arith.constant 0 : i32
    %c0_i32_1 = arith.constant 0 : i32
    return %c0_i32, %c0_i32_0 : i32, i32
  }
  func.func @transform_3(%arg0: i32, %arg1: i32) -> (i32, i32) {
    %c0_i32 = arith.constant 0 : i32
    %c0_i32_0 = arith.constant 0 : i32
    %c0_i32_1 = arith.constant 0 : i32
    return %c0_i32, %c0_i32_0 : i32, i32
  }
  func.func @transform_4(%arg0: i32, %arg1: i32) -> (i32, i32) {
    %c0_i32 = arith.constant 0 : i32
    %c0_i32_0 = arith.constant 0 : i32
    return %arg0, %c0_i32 : i32, i32
  }
}

</mosaic_0001>

<bundles_post_ra>
// kernel: tpu_custom_call.1
= control target key start
LH: loop header
LB: loop body
LE: loop exit
PB: predicated region body
PF: predicated region fallthrough
CT: control target
= control target key end

     0   :  { %9 = vsyncpa [#allocation4], 0  ;;  %s588_s0 = inlined_call_operand.hbm [shape: bf16[8,128], index: 0, kind: input, shape index: {}]   ;;  %s589_s1 = inlined_call_operand.hbm [shape: bf16[128,128], index: 1, kind: input, shape index: {}]   ;;  %s590_s2 = inlined_call_operand.hbm [shape: bf16[128,128], index: 2, kind: input, shape index: {}]   ;;  %s591_s3 = inlined_call_operand.vmem [shape: f32[1,128], index: 3, kind: input, shape index: {}]   ;;  %s592_s4 = inlined_call_operand.hbm [shape: f32[8,128], index: 4, kind: output, shape index: {}]  }
   0x1   :  { %10 = vsyncpa [#allocation7], 0 }
   0x2   :  { %11 = vsyncpa [#allocation5], 0  ;;  %s498_s15 = smov [#allocation6]   ;;  %s404_s19 = scalar_lea.hbm %s589_s1, 1024 }
   0x3   :  { %s27_s16 = sshll.u32 %s498_s15, 4  ;;  %p405_p0 = scmp.ne.s32.totalorder %s589_s1, %s404_s19  ;;  %s28_s16 = int_to_ptr.vmem [resolvable:$true] %s27_s16 }
   0x4   :  { %p408_p1 = scmp.lt.u32.totalorder %s404_s19, %s589_s1 }
   0x6   :  { %p410_p2 = pnand %p408_p1, %p405_p0 }
   0x8   :  { %413 = shalt.err (!%p410_p2)
}
   0x9   :  { %s414_s24 = scalar_lea.vmem %s28_s16, 1024  ;;  %p419_p4 = scmp.lt.s32.totalorder %s28_s16, %s28_s16 }
   0xa   :  { %p415_p3 = scmp.ne.s32.totalorder %s28_s16, %s414_s24  ;;  %p420_p5 = scmp.lt.s32.totalorder %s414_s24, %s414_s24 }
   0xc   :  { %p421_p6 = por %p420_p5, %p419_p4 }
   0xe   :  { %p422_p7 = pnand %p421_p6, %p415_p3 }
  0x10   :  { %425 = shalt.err (!%p422_p7)
}
  0x11   :  { %s499_s25 = smov 64   ;;  %s500_s26 = smov 4  }
  0x12   :  { %33 = dma.hbm_to_vmem [thread:$0]  %s589_s1, 1024, %s28_s16, [#allocation7], %s499_s25, %s499_s25, %s500_s26  }
  0x13   :  { %s501_s29 = smov [#allocation3]   ;;  %s502_s5 = smov [#allocation8]  }
  0x14   :  { %s18_s30 = sshll.u32 %s501_s29, 4  ;;  %s39_s6 = sshll.u32 %s502_s5, 4  ;;  %s19_s30 = int_to_ptr.vmem [resolvable:$true] %s18_s30  ;;  %s40_s6 = int_to_ptr.vmem [resolvable:$true] %s39_s6 }
  0x15   :  { %s426_s9 = scalar_lea.hbm %s588_s0, 64 }
  0x16   :  { %p427_p8 = scmp.ne.s32.totalorder %s588_s0, %s426_s9  ;;  %p430_p9 = scmp.lt.u32.totalorder %s426_s9, %s588_s0 }
  0x18   :  { %p432_p10 = pnand %p430_p9, %p427_p8 }
  0x1a   :  { %435 = shalt.err (!%p432_p10)
}
  0x1b   :  { %s436_s1 = scalar_lea.vmem %s19_s30, 64  ;;  %p441_p12 = scmp.lt.s32.totalorder %s19_s30, %s19_s30 }
  0x1c   :  { %p437_p11 = scmp.ne.s32.totalorder %s19_s30, %s436_s1  ;;  %p442_p13 = scmp.lt.s32.totalorder %s436_s1, %s436_s1 }
  0x1e   :  { %p443_p0 = por %p442_p13, %p441_p12 }
  0x20   :  { %p444_p1 = pnand %p443_p0, %p437_p11 }
  0x22   :  { %447 = shalt.err (!%p444_p1)
}
  0x23   :  { %21 = dma.hbm_to_vmem [thread:$0]  %s588_s0, 64, %s19_s30, [#allocation4]  }
  0x24   :  { %s448_s18 = scalar_lea.hbm %s590_s2, 1024 }
  0x25   :  { %p449_p2 = scmp.ne.s32.totalorder %s590_s2, %s448_s18  ;;  %p452_p3 = scmp.lt.u32.totalorder %s448_s18, %s590_s2 }
  0x27   :  { %p454_p4 = pnand %p452_p3, %p449_p2 }
  0x29   :  { %457 = shalt.err (!%p454_p4)
}
  0x2a   :  { %s458_s23 = scalar_lea.vmem %s40_s6, 1024  ;;  %p463_p6 = scmp.lt.s32.totalorder %s40_s6, %s40_s6 }
  0x2b   :  { %p459_p5 = scmp.ne.s32.totalorder %s40_s6, %s458_s23  ;;  %p464_p7 = scmp.lt.s32.totalorder %s458_s23, %s458_s23 }
  0x2d   :  { %p465_p8 = por %p464_p7, %p463_p6 }
  0x2f   :  { %p466_p9 = pnand %p465_p8, %p459_p5 }
  0x31   :  { %469 = shalt.err (!%p466_p9)
}
  0x32   :  { %45 = dma.hbm_to_vmem [thread:$0]  %s590_s2, 1024, %s40_s6, [#allocation7], %s499_s25, %s499_s25, %s500_s26  }
  0x33   :  { %492 = dma.done.wait [#allocation4], 64  }
  0x34   :  { %493 = vsyncadd [#allocation4], 4294967232 }
  0x35   :  { %494 = dma.done.wait [#allocation7], 2048  }
  0x36   :  { %495 = vsyncadd [#allocation7], 4294965248  ;;  %v503_v0 = vmov 0.0   ;;  %vm504_vm0 = vmmov 0   ;;  %v388_v1 = vld [vmem:[#allocation6] sm:$0xff]   ;;  %v389_v2 = vld [vmem:[#allocation6 + $0x8] sm:$0xff]  }
  0x37   :  { %340 = vmatprep.subr.bf16.mxu0 %v503_v0  ;;  %356 = vmatprep.mubr.msk.bf16.mxu0 %vm504_vm0, %v503_v0  ;;  %v390_v3 = vld [vmem:[#allocation6 + $0x10] sm:$0xff]   ;;  %v396_v4 = vld [vmem:[#allocation8] sm:$0xff]   ;;  %v391_v5 = vld [vmem:[#allocation6 + $0x18] sm:$0xff]   ;;  %s505_s26 = smov [#allocation9]  }
  0x38   :  { %360 = vmatprep.subr.bf16.mxu1 %v503_v0  ;;  %376 = vmatprep.mubr.msk.bf16.mxu1 %vm504_vm0, %v503_v0  ;;  %v397_v6 = vld [vmem:[#allocation8 + $0x8] sm:$0xff]   ;;  %v392_v7 = vld [vmem:[#allocation6 + $0x20] sm:$0xff]   ;;  %v398_v8 = vld [vmem:[#allocation8 + $0x10] sm:$0xff]   ;;  %s295_s27 = sshll.u32 %s505_s26, 4  ;;  %s296_s27 = int_to_ptr.vmem [resolvable:$true] %s295_s27 }
  0x39   :  { %341 = vmatpush3.bf16.msra.mxu0 %v388_v1  ;;  %361 = vmatpush3.bf16.msra.mxu1 %v396_v4  ;;  %v393_v9 = vld [vmem:[#allocation6 + $0x28] sm:$0xff]   ;;  %v399_v10 = vld [vmem:[#allocation8 + $0x18] sm:$0xff]   ;;  %v394_v11 = vld [vmem:[#allocation6 + $0x30] sm:$0xff]   ;;  %s470_s28 = scalar_lea.vmem %s296_s27, 128  ;;  %p475_p11 = scmp.lt.s32.totalorder %s296_s27, %s296_s27 }
  0x3a   :  { %342 = vmatprep.subr.bf16.mxu0 %v503_v0  ;;  %362 = vmatprep.subr.bf16.mxu1 %v503_v0  ;;  %v400_v12 = vld [vmem:[#allocation8 + $0x20] sm:$0xff]   ;;  %v395_v13 = vld [vmem:[#allocation6 + $0x38] sm:$0xff]   ;;  %v401_v14 = vld [vmem:[#allocation8 + $0x28] sm:$0xff]   ;;  %p471_p10 = scmp.ne.s32.totalorder %s296_s27, %s470_s28  ;;  %p476_p12 = scmp.lt.s32.totalorder %s470_s28, %s470_s28 }
  0x3b   :  { %v64_v15 = vld [vmem:[#allocation3] sm:$0xf]  ;;  %v402_v16 = vld [vmem:[#allocation8 + $0x30] sm:$0xff]  }
  0x3c   :  { %v403_v17 = vld [vmem:[#allocation8 + $0x38] sm:$0xff]   ;;  %p477_p13 = por %p476_p12, %p475_p11 }
  0x3d   :  { %343 = vmatpush3.bf16.msra.mxu0 %v389_v2  ;;  %363 = vmatpush3.bf16.msra.mxu1 %v397_v6  ;;  %v313_v24 = vld [vmem:[%s591_s3] ss:$0 sm:$0xff] }
  0x3e   :  { %344 = vmatprep.subr.bf16.mxu0 %v503_v0  ;;  %364 = vmatprep.subr.bf16.mxu1 %v503_v0  ;;  %p478_p0 = pnand %p477_p13, %p471_p10 }
  0x41   :  { %345 = vmatpush3.bf16.msra.mxu0 %v390_v3  ;;  %365 = vmatpush3.bf16.msra.mxu1 %v398_v8 }
  0x42   :  { %346 = vmatprep.subr.bf16.mxu0 %v503_v0  ;;  %366 = vmatprep.subr.bf16.mxu1 %v503_v0 }
  0x45   :  { %347 = vmatpush3.bf16.msra.mxu0 %v391_v5  ;;  %367 = vmatpush3.bf16.msra.mxu1 %v399_v10 }
  0x46   :  { %348 = vmatprep.subr.bf16.mxu0 %v503_v0  ;;  %368 = vmatprep.subr.bf16.mxu1 %v503_v0 }
  0x49   :  { %349 = vmatpush3.bf16.msra.mxu0 %v392_v7  ;;  %369 = vmatpush3.bf16.msra.mxu1 %v400_v12 }
  0x4a   :  { %350 = vmatprep.subr.bf16.mxu0 %v503_v0  ;;  %370 = vmatprep.subr.bf16.mxu1 %v503_v0 }
  0x4d   :  { %351 = vmatpush3.bf16.msra.mxu0 %v393_v9  ;;  %371 = vmatpush3.bf16.msra.mxu1 %v401_v14 }
  0x4e   :  { %352 = vmatprep.subr.bf16.mxu0 %v503_v0  ;;  %372 = vmatprep.subr.bf16.mxu1 %v503_v0 }
  0x51   :  { %353 = vmatpush3.bf16.msra.mxu0 %v394_v11  ;;  %373 = vmatpush3.bf16.msra.mxu1 %v402_v16 }
  0x52   :  { %354 = vmatprep.subr.bf16.mxu0 %v503_v0  ;;  %374 = vmatprep.subr.bf16.mxu1 %v503_v0 }
  0x55   :  { %355 = vmatpush3.bf16.msra.mxu0 %v395_v13  ;;  %375 = vmatpush3.bf16.msra.mxu1 %v403_v17 }
  0x58   :  { %357 = vmatmul.mubr.bf16.vlgmr.msra.gmra.mrb[0].mxu0 %v64_v15 }
 0x12b   :  { %v163_v18 = vpop.f32.mrb[0].mxu0 }
 0x12c   :  { %v175_v19 = vmul.f32 0.125, %v163_v18  ;;  %v358_v20 = vpop.f32.mrb[1].mxu0 }
 0x12d   :  { %v166_v21 = vpop.f32.mrb[2].mxu0 }
 0x12e   :  { %v176_v22 = vpack.c.bf16 %v175_v19, %v175_v19  ;;  %v359_v23 = vpop.f32.mrb[3].mxu0 }
 0x130   :  { %377 = vmatmul.mubr.bf16.vlgmr.msra.gmra.mrb[0].mxu1 %v176_v22 }
 0x203   :  { %v282_v25 = vpop.f32.mrb[0].mxu1 }
 0x204   :  { %v283_v26 = vadd.f32 %v313_v24, %v282_v25  ;;  %v378_v27 = vpop.f32.mrb[1].mxu1 }
 0x205   :  { %v285_v28 = vpop.f32.mrb[2].mxu1 }
 0x206   :  { %288 = vst [vmem:[#allocation9] sm:$0xff] %v283_v26  ;;  %v379_v29 = vpop.f32.mrb[3].mxu1 }
 0x207   :  { %481 = shalt.err (!%p478_p0)
}
 0x208   :  { %s482_s3 = scalar_lea.hbm %s592_s4, 128 }
 0x209   :  { %p483_p1 = scmp.ne.s32.totalorder %s592_s4, %s482_s3  ;;  %p486_p2 = scmp.lt.u32.totalorder %s482_s3, %s592_s4 }
 0x20b   :  { %p488_p3 = pnand %p486_p2, %p483_p1 }
 0x20d   :  { %491 = shalt.err (!%p488_p3)
}
 0x20e   :  { %298 = dma.vmem_to_hbm [thread:$0]  %s296_s27, 128, %s592_s4, [#allocation5]  }
 0x20f   :  { %496 = dma.done.wait [#allocation5], 128  }
 0x210   :  { %497 = vsyncadd [#allocation5], 4294967168 }
 0x211   :  { %302 = vsyncpa [#allocation4], 1 }
 0x212   :  { %303 = vsyncpa [#allocation7], 1 }
 0x213   :  { %304 = vsyncpa [#allocation5], 1 }

</bundles_post_ra>
